<compile_context>
chip_gen: v7x
topology: tpu7x:2x2x1
jax: 0.10.0
libtpu: 0.0.40
codegen_flags: <defaults>
</compile_context>

<pallas_src>
import functools

import jax
import jax.numpy as jnp
import numpy as np
from jax import lax
from jax.experimental import pallas as pl
from jax.experimental.pallas import tpu as pltpu


def _edge_interp_kernel(dxyz_ref, sxyz_t_ref, dfeat_ref, sfeat_ref, out_ref,
                        *, num_neighbors, eps):
    """Per (batch, N1-tile) kernel.

    dxyz_ref  : (3,  TN1)   dense/query xyz tile
    sxyz_t_ref: (N2, 3)     sparse/key xyz, transposed (points on sublanes)
    dfeat_ref : (C1, TN1)   dense feature tile
    sfeat_ref : (C2, N2)    sparse features (kept in input dtype)
    out_ref   : (K, 2*C2 + C1, TN1)
    """
    k_nn = num_neighbors
    dxyz = dxyz_ref[...].astype(jnp.float32)
    sxyz_t = sxyz_t_ref[...].astype(jnp.float32)
    sfeat = sfeat_ref[...]                       # native dtype (f32 / bf16)

    n2 = sxyz_t.shape[0]
    tn1 = dxyz.shape[1]
    c2 = sfeat.shape[0]

    # Pairwise squared distances (N2, TN1), diff-squared form (no
    # ||a||^2 + ||b||^2 - 2ab cancellation), 3 coordinate rows unrolled on the
    # VPU so the MXU stays free for the feature gathers below.
    d2 = jnp.zeros((n2, tn1), jnp.float32)
    for c in range(3):
        diff = sxyz_t[:, c:c + 1] - dxyz[c:c + 1, :]          # (N2,1)-(1,TN1)
        d2 = d2 + diff * diff

    iota_col = lax.broadcasted_iota(jnp.int32, (n2, 1), 0)    # (N2,1) column
    big = jnp.float32(1e30)

    # Fused K-argmin + gather loop.  Only `cur` stays live as a full (N2,TN1)
    # float buffer; per-k results are small (1,TN1) / (C2,TN1) rows.
    cur = d2
    norm = jnp.zeros((1, tn1), jnp.float32)
    inv_ds = []
    gathered = []
    for _ in range(k_nn):
        mval = jnp.min(cur, axis=0, keepdims=True)                    # (1,TN1)
        # lowest sparse index among equal-distance ties (matches three-nn)
        midx = jnp.min(jnp.where(cur == mval, iota_col, n2),
                       axis=0, keepdims=True)                         # (1,TN1)
        sel = iota_col == midx                                        # (N2,TN1)
        # exact reciprocal on a (1,TN1) row: negligible cost, exact parity
        # with the PyTorch module (the approx version was the v2 bug).
        inv_d = 1.0 / jnp.maximum(mval, eps)
        norm = norm + inv_d
        inv_ds.append(inv_d)
        # gather_knn: one-hot MXU matmul reusing `sel` directly.
        oh = sel.astype(sfeat.dtype)
        gathered.append(jnp.dot(sfeat, oh,
                                preferred_element_type=jnp.float32))  # (C2,TN1)
        cur = jnp.where(sel, big, cur)

    # feature_interpolate: interp = sum_k (inv_d_k / norm) * gathered_k
    inv_norm = 1.0 / norm                                             # (1,TN1)
    interp = (inv_ds[0] * inv_norm) * gathered[0]
    for kk in range(1, k_nn):
        interp = interp + (inv_ds[kk] * inv_norm) * gathered[kk]

    interp_o = interp.astype(out_ref.dtype)
    dfeat_o = dfeat_ref[...].astype(out_ref.dtype)

    # Direct sliced stores, channel order [interp, gathered_k - interp, dense].
    # TODO(synk): pad C2/C1 to multiples of 8 for fully unmasked (8,128) stores.
    for kk in range(k_nn):
        out_ref[kk, 0:c2, :] = interp_o
        out_ref[kk, c2:2 * c2, :] = (gathered[kk] - interp).astype(out_ref.dtype)
        out_ref[kk, 2 * c2:, :] = dfeat_o


def _pick_tile_n1(N1, N2, C1, C2, K, *, max_tile=512, temp_budget=20 << 20):
    """Largest 128-aligned N1 tile whose per-lane VMEM footprint fits budget."""
    c_out = 2 * C2 + C1
    # f32 bytes per dense-point lane simultaneously resident:
    #   ~4 (N2,) working columns (cur + compare/select temps),
    #   (K+1) (C2,) gathered/interp rows,
    #   2x double-buffered output block rows, 2x double-buffered dense inputs.
    per_lane = 4 * (4 * N2 + (K + 1) * C2 + 2 * K * c_out + 2 * (3 + C1))
    tile = temp_budget // max(per_lane, 1)
    tile = max(128, min(int(max_tile), (int(tile) // 128) * 128))
    return N1 if N1 <= tile else tile


def edge_feature_interpolator(dense_xyz, sparse_xyz, dense_feature,
                              sparse_feature, num_neighbors, eps=1e-10,
                              *, max_tile_n1=512, torch_layout=True):
    """Forward pass of EdgeFeatureInterpolator.

    Channel-first inputs like PyTorch:
      dense_xyz (B,3,N1), sparse_xyz (B,3,N2),
      dense_feature (B,C1,N1), sparse_feature (B,C2,N2).
    Returns (B, 2*C2+C1, N1, K) when torch_layout=True (PyTorch contract);
    otherwise the lane-dense kernel layout (B, K, 2*C2+C1, N1), which skips a
    full extra HBM pass over the K-replicated output (preferred for on-device
    consumers).
    """
    B, _, N1 = dense_xyz.shape
    _, _, N2 = sparse_xyz.shape
    C1 = dense_feature.shape[1]
    C2 = sparse_feature.shape[1]
    K = num_neighbors
    C_out = 2 * C2 + C1

    if K > N2:
        raise ValueError("num_neighbors must be <= number of sparse points")

    TN1 = _pick_tile_n1(N1, N2, C1, C2, K, max_tile=max_tile_n1)
    n1_tiles = pl.cdiv(N1, TN1)
    # v7x has 2 TensorCores per chip: make sure the parallel grid has >= 2
    # steps when the problem allows it (each lane/query is independent, so a
    # ragged last tile is safe: padded lanes are masked on writeback).
    if B * n1_tiles < 2 and N1 >= 256:
        TN1 = max(128, ((N1 // 2) // 128) * 128)
        n1_tiles = pl.cdiv(N1, TN1)

    # Explicit VMEM budget: batch-resident sparse blocks + double-buffered
    # dense/out tiles + kernel temporaries, capped at v7x's 64 MiB physical.
    resident = 4 * 2 * (3 * N2 + C2 * N2)
    tiles = 4 * 2 * TN1 * (3 + C1 + K * C_out)
    temps = 4 * TN1 * (4 * N2 + (K + 1) * C2)
    vmem_limit = int(min(64 * 1024 * 1024,
                         max(32 * 1024 * 1024,
                             int(1.5 * (resident + tiles + temps)))))

    # Tiny wrapper-side transpose so sparse xyz sits points-on-sublanes inside
    # the kernel ((N2,3): per-coordinate lane broadcasts, no in-kernel
    # transpose).
    sparse_xyz_t = jnp.transpose(sparse_xyz, (0, 2, 1))

    kernel = functools.partial(_edge_interp_kernel,
                               num_neighbors=K, eps=eps)

    grid_spec = pltpu.PrefetchScalarGridSpec(
        num_scalar_prefetch=0,
        grid=(B, n1_tiles),
        in_specs=[
            pl.BlockSpec((None, 3, TN1), lambda b, t: (b, 0, t)),
            pl.BlockSpec((None, N2, 3), lambda b, t: (b, 0, 0)),
            pl.BlockSpec((None, C1, TN1), lambda b, t: (b, 0, t)),
            pl.BlockSpec((None, C2, N2), lambda b, t: (b, 0, 0)),
        ],
        out_specs=pl.BlockSpec((None, K, C_out, TN1),
                               lambda b, t: (b, 0, 0, t)),
    )

    cost = pl.CostEstimate(
        flops=int(B * N1 * (N2 * (9 + 6 * K) + 2 * K * C2 * N2 + 4 * K * C2)),
        transcendentals=0,
        bytes_accessed=int(4 * B * (3 * N1 + 3 * N2 + C1 * N1 + C2 * N2
                                    + K * C_out * N1)),
    )

    out = pl.pallas_call(
        kernel,
        out_shape=jax.ShapeDtypeStruct((B, K, C_out, N1), jnp.float32),
        grid_spec=grid_spec,
        compiler_params=pltpu.CompilerParams(
            dimension_semantics=("parallel", "parallel"),
            vmem_limit_bytes=vmem_limit),
        cost_estimate=cost,
    )(dense_xyz, sparse_xyz_t, dense_feature, sparse_feature)

    if torch_layout:
        # PyTorch layout (B, C_out, N1, K): one extra HBM pass over the
        # K-replicated output.  On-device consumers should prefer
        # torch_layout=False and consume the lane-dense layout directly.
        return jnp.transpose(out, (0, 2, 3, 1))
    return out


def _reference(dense_xyz, sparse_xyz, dense_feature, sparse_feature, K, eps):
    """Pure-JAX reference of the PyTorch forward pass."""
    diff = dense_xyz[:, :, :, None] - sparse_xyz[:, :, None, :]   # (B,3,N1,N2)
    d2 = jnp.sum(diff * diff, axis=1)                             # (B,N1,N2)
    neg_top, idx = lax.top_k(-d2, K)                              # ascending
    dist = -neg_top                                               # (B,N1,K)
    inv_d = 1.0 / jnp.maximum(dist, eps)
    w = inv_d / jnp.sum(inv_d, axis=2, keepdims=True)             # (B,N1,K)
    gathered = jnp.take_along_axis(sparse_feature[:, :, None, :],
                                   idx[:, None, :, :], axis=3)    # (B,C2,N1,K)
    interp = jnp.sum(gathered * w[:, None, :, :], axis=3)         # (B,C2,N1)
    interp_e = jnp.broadcast_to(interp[..., None], gathered.shape)
    dfe = jnp.broadcast_to(dense_feature[..., None],
                           dense_feature.shape + (K,))
    return jnp.concatenate([interp_e, gathered - interp_e, dfe], axis=1)


if __name__ == "__main__":
    B, N1, N2, C1, C2, K = 2, 16, 8, 4, 6, 3
    key = jax.random.PRNGKey(0)
    k1, k2, k3, k4 = jax.random.split(key, 4)
    dense_xyz = jax.random.normal(k1, (B, 3, N1), jnp.float32)
    sparse_xyz = jax.random.normal(k2, (B, 3, N2), jnp.float32)
    dense_feature = jax.random.normal(k3, (B, C1, N1), jnp.float32)
    sparse_feature = jax.random.normal(k4, (B, C2, N2), jnp.float32)

    out = edge_feature_interpolator(dense_xyz, sparse_xyz,
                                    dense_feature, sparse_feature,
                                    num_neighbors=K)
    out = jax.block_until_ready(out)
    assert out.shape == (B, 2 * C2 + C1, N1, K), out.shape

    ref = _reference(dense_xyz, sparse_xyz, dense_feature, sparse_feature,
                     K, 1e-10)
    ref = jax.block_until_ready(ref)
    assert np.allclose(np.asarray(out), np.asarray(ref),
                       rtol=1e-4, atol=1e-4), "mismatch vs reference"

    # also exercise the lane-dense (no trailing transpose) layout
    out_k = edge_feature_interpolator(dense_xyz, sparse_xyz,
                                      dense_feature, sparse_feature,
                                      num_neighbors=K, torch_layout=False)
    out_k = jax.block_until_ready(out_k)
    assert np.allclose(np.transpose(np.asarray(out_k), (0, 2, 3, 1)),
                       np.asarray(ref), rtol=1e-4, atol=1e-4)

    print("KERNEL_OK")
</pallas_src>

<mosaic_0001>
module attributes {stable_mosaic.version = 11 : i64} {
  func.func @_edge_interp_kernel(%arg0: i32, %arg1: i32, %arg2: memref<1x3x16xf32, #tpu.memory_space<vmem>>, %arg3: memref<1x8x3xf32, #tpu.memory_space<vmem>>, %arg4: memref<1x4x16xf32, #tpu.memory_space<vmem>>, %arg5: memref<1x6x8xf32, #tpu.memory_space<vmem>>, %arg6: memref<1x3x16x16xf32, #tpu.memory_space<vmem>>) attributes {dimension_semantics = [#tpu.dimension_semantics<parallel>, #tpu.dimension_semantics<parallel>], iteration_bounds = array<i64: 2, 1>, scalar_prefetch = 0 : i64, scratch_operands = 0 : i64, tpu.core_type = #tpu.core_type<tc>, window_params = [{transform_indices = @transform_0, window_bounds = array<i64: 1, 3, 16>}, {transform_indices = @transform_1, window_bounds = array<i64: 1, 8, 3>}, {transform_indices = @transform_2, window_bounds = array<i64: 1, 4, 16>}, {transform_indices = @transform_3, window_bounds = array<i64: 1, 6, 8>}, {transform_indices = @transform_4, window_bounds = array<i64: 1, 3, 16, 16>}]} {
    %c0 = arith.constant 0 : index
    %c0_0 = arith.constant 0 : index
    %c0_1 = arith.constant 0 : index
    %0 = vector.load %arg2[%c0, %c0_0, %c0_1] : memref<1x3x16xf32, #tpu.memory_space<vmem>>, vector<1x3x16xf32>
    %1 = vector.shape_cast %0 : vector<1x3x16xf32> to vector<3x16xf32>
    %c0_2 = arith.constant 0 : index
    %c0_3 = arith.constant 0 : index
    %c0_4 = arith.constant 0 : index
    %2 = vector.load %arg3[%c0_2, %c0_3, %c0_4] : memref<1x8x3xf32, #tpu.memory_space<vmem>>, vector<1x8x3xf32>
    %3 = vector.shape_cast %2 : vector<1x8x3xf32> to vector<8x3xf32>
    %c0_5 = arith.constant 0 : index
    %c0_6 = arith.constant 0 : index
    %c0_7 = arith.constant 0 : index
    %4 = vector.load %arg5[%c0_5, %c0_6, %c0_7] : memref<1x6x8xf32, #tpu.memory_space<vmem>>, vector<1x6x8xf32>
    %5 = vector.shape_cast %4 : vector<1x6x8xf32> to vector<6x8xf32>
    %cst = arith.constant 0.000000e+00 : f32
    %6 = vector.broadcast %cst : f32 to vector<8x16xf32>
    %7 = vector.extract_strided_slice %3 {offsets = [0, 0], sizes = [8, 1], strides = [1, 1]} : vector<8x3xf32> to vector<8x1xf32>
    %8 = vector.extract_strided_slice %1 {offsets = [0, 0], sizes = [1, 16], strides = [1, 1]} : vector<3x16xf32> to vector<1x16xf32>
    %9 = vector.broadcast %7 : vector<8x1xf32> to vector<8x16xf32>
    %10 = vector.broadcast %8 : vector<1x16xf32> to vector<8x16xf32>
    %11 = arith.subf %9, %10 : vector<8x16xf32>
    %12 = arith.mulf %11, %11 : vector<8x16xf32>
    %13 = arith.addf %6, %12 : vector<8x16xf32>
    %14 = vector.extract_strided_slice %3 {offsets = [0, 1], sizes = [8, 1], strides = [1, 1]} : vector<8x3xf32> to vector<8x1xf32>
    %15 = vector.extract_strided_slice %1 {offsets = [1, 0], sizes = [1, 16], strides = [1, 1]} : vector<3x16xf32> to vector<1x16xf32>
    %16 = vector.broadcast %14 : vector<8x1xf32> to vector<8x16xf32>
    %17 = vector.broadcast %15 : vector<1x16xf32> to vector<8x16xf32>
    %18 = arith.subf %16, %17 : vector<8x16xf32>
    %19 = arith.mulf %18, %18 : vector<8x16xf32>
    %20 = arith.addf %13, %19 : vector<8x16xf32>
    %21 = vector.extract_strided_slice %3 {offsets = [0, 2], sizes = [8, 1], strides = [1, 1]} : vector<8x3xf32> to vector<8x1xf32>
    %22 = vector.extract_strided_slice %1 {offsets = [2, 0], sizes = [1, 16], strides = [1, 1]} : vector<3x16xf32> to vector<1x16xf32>
    %23 = vector.broadcast %21 : vector<8x1xf32> to vector<8x16xf32>
    %24 = vector.broadcast %22 : vector<1x16xf32> to vector<8x16xf32>
    %25 = arith.subf %23, %24 : vector<8x16xf32>
    %26 = arith.mulf %25, %25 : vector<8x16xf32>
    %27 = arith.addf %20, %26 : vector<8x16xf32>
    %28 = tpu.iota {dimensions = array<i32: 0>} : vector<8x1xi32>
    %cst_8 = arith.constant 0.000000e+00 : f32
    %29 = vector.broadcast %cst_8 : f32 to vector<1x16xf32>
    %cst_9 = arith.constant dense<0x7F800000> : vector<16xf32>
    %30 = vector.multi_reduction <minimumf>, %27, %cst_9 [0] : vector<8x16xf32> to vector<16xf32>
    %31 = vector.shape_cast %30 : vector<16xf32> to vector<1x16xf32>
    %32 = vector.broadcast %31 : vector<1x16xf32> to vector<8x16xf32>
    %33 = arith.cmpf oeq, %27, %32 : vector<8x16xf32>
    %c8_i32 = arith.constant 8 : i32
    %34 = vector.shape_cast %28 : vector<8x1xi32> to vector<8x1xi32>
    %35 = vector.broadcast %34 : vector<8x1xi32> to vector<8x16xi32>
    %36 = vector.broadcast %c8_i32 : i32 to vector<8x16xi32>
    %37 = arith.select %33, %35, %36 : vector<8x16xi1>, vector<8x16xi32>
    %cst_10 = arith.constant dense<2147483647> : vector<16xi32>
    %38 = vector.multi_reduction <minsi>, %37, %cst_10 [0] : vector<8x16xi32> to vector<16xi32>
    %39 = vector.shape_cast %38 : vector<16xi32> to vector<1x16xi32>
    %40 = vector.broadcast %28 : vector<8x1xi32> to vector<8x16xi32>
    %41 = vector.broadcast %39 : vector<1x16xi32> to vector<8x16xi32>
    %42 = arith.cmpi eq, %40, %41 : vector<8x16xi32>
    %cst_11 = arith.constant 1.000000e-10 : f32
    %43 = vector.broadcast %cst_11 : f32 to vector<1x16xf32>
    %44 = arith.maximumf %31, %43 : vector<1x16xf32>
    %cst_12 = arith.constant 1.000000e+00 : f32
    %45 = vector.broadcast %cst_12 : f32 to vector<1x16xf32>
    %46 = arith.divf %45, %44 : vector<1x16xf32>
    %47 = arith.addf %29, %46 : vector<1x16xf32>
    %48 = arith.extui %42 : vector<8x16xi1> to vector<8x16xi32>
    %49 = arith.sitofp %48 : vector<8x16xi32> to vector<8x16xf32>
    %cst_13 = arith.constant dense<0.000000e+00> : vector<6x16xf32>
    %50 = tpu.matmul %5, %49, %cst_13 {dimension_numbers = #tpu.dot_dimension_numbers<[1], [0], [0], [1], [0, 0, 1, 1], [], []>} : vector<6x8xf32>, vector<8x16xf32>, vector<6x16xf32> -> vector<6x16xf32>
    %cst_14 = arith.constant 1.000000e+30 : f32
    %51 = vector.broadcast %cst_14 : f32 to vector<8x16xf32>
    %52 = arith.select %42, %51, %27 : vector<8x16xi1>, vector<8x16xf32>
    %cst_15 = arith.constant dense<0x7F800000> : vector<16xf32>
    %53 = vector.multi_reduction <minimumf>, %52, %cst_15 [0] : vector<8x16xf32> to vector<16xf32>
    %54 = vector.shape_cast %53 : vector<16xf32> to vector<1x16xf32>
    %55 = vector.broadcast %54 : vector<1x16xf32> to vector<8x16xf32>
    %56 = arith.cmpf oeq, %52, %55 : vector<8x16xf32>
    %c8_i32_16 = arith.constant 8 : i32
    %57 = vector.shape_cast %28 : vector<8x1xi32> to vector<8x1xi32>
    %58 = vector.broadcast %57 : vector<8x1xi32> to vector<8x16xi32>
    %59 = vector.broadcast %c8_i32_16 : i32 to vector<8x16xi32>
    %60 = arith.select %56, %58, %59 : vector<8x16xi1>, vector<8x16xi32>
    %cst_17 = arith.constant dense<2147483647> : vector<16xi32>
    %61 = vector.multi_reduction <minsi>, %60, %cst_17 [0] : vector<8x16xi32> to vector<16xi32>
    %62 = vector.shape_cast %61 : vector<16xi32> to vector<1x16xi32>
    %63 = vector.broadcast %28 : vector<8x1xi32> to vector<8x16xi32>
    %64 = vector.broadcast %62 : vector<1x16xi32> to vector<8x16xi32>
    %65 = arith.cmpi eq, %63, %64 : vector<8x16xi32>
    %cst_18 = arith.constant 1.000000e-10 : f32
    %66 = vector.broadcast %cst_18 : f32 to vector<1x16xf32>
    %67 = arith.maximumf %54, %66 : vector<1x16xf32>
    %cst_19 = arith.constant 1.000000e+00 : f32
    %68 = vector.broadcast %cst_19 : f32 to vector<1x16xf32>
    %69 = arith.divf %68, %67 : vector<1x16xf32>
    %70 = arith.addf %47, %69 : vector<1x16xf32>
    %71 = arith.extui %65 : vector<8x16xi1> to vector<8x16xi32>
    %72 = arith.sitofp %71 : vector<8x16xi32> to vector<8x16xf32>
    %cst_20 = arith.constant dense<0.000000e+00> : vector<6x16xf32>
    %73 = tpu.matmul %5, %72, %cst_20 {dimension_numbers = #tpu.dot_dimension_numbers<[1], [0], [0], [1], [0, 0, 1, 1], [], []>} : vector<6x8xf32>, vector<8x16xf32>, vector<6x16xf32> -> vector<6x16xf32>
    %cst_21 = arith.constant 1.000000e+30 : f32
    %74 = vector.broadcast %cst_21 : f32 to vector<8x16xf32>
    %75 = arith.select %65, %74, %52 : vector<8x16xi1>, vector<8x16xf32>
    %cst_22 = arith.constant dense<0x7F800000> : vector<16xf32>
    %76 = vector.multi_reduction <minimumf>, %75, %cst_22 [0] : vector<8x16xf32> to vector<16xf32>
    %77 = vector.shape_cast %76 : vector<16xf32> to vector<1x16xf32>
    %78 = vector.broadcast %77 : vector<1x16xf32> to vector<8x16xf32>
    %79 = arith.cmpf oeq, %75, %78 : vector<8x16xf32>
    %c8_i32_23 = arith.constant 8 : i32
    %80 = vector.shape_cast %28 : vector<8x1xi32> to vector<8x1xi32>
    %81 = vector.broadcast %80 : vector<8x1xi32> to vector<8x16xi32>
    %82 = vector.broadcast %c8_i32_23 : i32 to vector<8x16xi32>
    %83 = arith.select %79, %81, %82 : vector<8x16xi1>, vector<8x16xi32>
    %cst_24 = arith.constant dense<2147483647> : vector<16xi32>
    %84 = vector.multi_reduction <minsi>, %83, %cst_24 [0] : vector<8x16xi32> to vector<16xi32>
    %85 = vector.shape_cast %84 : vector<16xi32> to vector<1x16xi32>
    %86 = vector.broadcast %28 : vector<8x1xi32> to vector<8x16xi32>
    %87 = vector.broadcast %85 : vector<1x16xi32> to vector<8x16xi32>
    %88 = arith.cmpi eq, %86, %87 : vector<8x16xi32>
    %cst_25 = arith.constant 1.000000e-10 : f32
    %89 = vector.broadcast %cst_25 : f32 to vector<1x16xf32>
    %90 = arith.maximumf %77, %89 : vector<1x16xf32>
    %cst_26 = arith.constant 1.000000e+00 : f32
    %91 = vector.broadcast %cst_26 : f32 to vector<1x16xf32>
    %92 = arith.divf %91, %90 : vector<1x16xf32>
    %93 = arith.addf %70, %92 : vector<1x16xf32>
    %94 = arith.extui %88 : vector<8x16xi1> to vector<8x16xi32>
    %95 = arith.sitofp %94 : vector<8x16xi32> to vector<8x16xf32>
    %cst_27 = arith.constant dense<0.000000e+00> : vector<6x16xf32>
    %96 = tpu.matmul %5, %95, %cst_27 {dimension_numbers = #tpu.dot_dimension_numbers<[1], [0], [0], [1], [0, 0, 1, 1], [], []>} : vector<6x8xf32>, vector<8x16xf32>, vector<6x16xf32> -> vector<6x16xf32>
    %cst_28 = arith.constant 1.000000e+00 : f32
    %97 = vector.broadcast %cst_28 : f32 to vector<1x16xf32>
    %98 = arith.divf %97, %93 : vector<1x16xf32>
    %99 = arith.mulf %46, %98 : vector<1x16xf32>
    %100 = vector.broadcast %99 : vector<1x16xf32> to vector<6x16xf32>
    %101 = arith.mulf %100, %50 : vector<6x16xf32>
    %102 = arith.mulf %69, %98 : vector<1x16xf32>
    %103 = vector.broadcast %102 : vector<1x16xf32> to vector<6x16xf32>
    %104 = arith.mulf %103, %73 : vector<6x16xf32>
    %105 = arith.addf %101, %104 : vector<6x16xf32>
    %106 = arith.mulf %92, %98 : vector<1x16xf32>
    %107 = vector.broadcast %106 : vector<1x16xf32> to vector<6x16xf32>
    %108 = arith.mulf %107, %96 : vector<6x16xf32>
    %109 = arith.addf %105, %108 : vector<6x16xf32>
    %c0_29 = arith.constant 0 : index
    %c0_30 = arith.constant 0 : index
    %c0_31 = arith.constant 0 : index
    %110 = vector.load %arg4[%c0_29, %c0_30, %c0_31] : memref<1x4x16xf32, #tpu.memory_space<vmem>>, vector<1x4x16xf32>
    %111 = vector.shape_cast %110 : vector<1x4x16xf32> to vector<4x16xf32>
    %c0_32 = arith.constant 0 : index
    %c0_33 = arith.constant 0 : index
    %c0_34 = arith.constant 0 : index
    %c0_35 = arith.constant 0 : index
    %112 = vector.load %arg6[%c0_32, %c0_33, %c0_34, %c0_35] : memref<1x3x16x16xf32, #tpu.memory_space<vmem>>, vector<1x1x6x16xf32>
    %113 = vector.shape_cast %112 : vector<1x1x6x16xf32> to vector<6x16xf32>
    %114 = vector.shape_cast %109 : vector<6x16xf32> to vector<1x1x6x16xf32>
    tpu.vector_store %arg6[%c0_32, %c0_33, %c0_34, %c0_35], %114 {strides = array<i32>} : memref<1x3x16x16xf32, #tpu.memory_space<vmem>>, vector<1x1x6x16xf32>,
    %115 = arith.subf %50, %109 : vector<6x16xf32>
    %c0_36 = arith.constant 0 : index
    %c0_37 = arith.constant 0 : index
    %c6 = arith.constant 6 : index
    %c0_38 = arith.constant 0 : index
    %116 = vector.load %arg6[%c0_36, %c0_37, %c6, %c0_38] : memref<1x3x16x16xf32, #tpu.memory_space<vmem>>, vector<1x1x6x16xf32>
    %117 = vector.shape_cast %116 : vector<1x1x6x16xf32> to vector<6x16xf32>
    %118 = vector.shape_cast %115 : vector<6x16xf32> to vector<1x1x6x16xf32>
    tpu.vector_store %arg6[%c0_36, %c0_37, %c6, %c0_38], %118 {strides = array<i32>} : memref<1x3x16x16xf32, #tpu.memory_space<vmem>>, vector<1x1x6x16xf32>,
    %c0_39 = arith.constant 0 : index
    %c0_40 = arith.constant 0 : index
    %c12 = arith.constant 12 : index
    %c0_41 = arith.constant 0 : index
    %119 = vector.load %arg6[%c0_39, %c0_40, %c12, %c0_41] : memref<1x3x16x16xf32, #tpu.memory_space<vmem>>, vector<1x1x4x16xf32>
    %120 = vector.shape_cast %119 : vector<1x1x4x16xf32> to vector<4x16xf32>
    %121 = vector.shape_cast %111 : vector<4x16xf32> to vector<1x1x4x16xf32>
    tpu.vector_store %arg6[%c0_39, %c0_40, %c12, %c0_41], %121 {strides = array<i32>} : memref<1x3x16x16xf32, #tpu.memory_space<vmem>>, vector<1x1x4x16xf32>,
    %c0_42 = arith.constant 0 : index
    %c1 = arith.constant 1 : index
    %c0_43 = arith.constant 0 : index
    %c0_44 = arith.constant 0 : index
    %122 = vector.load %arg6[%c0_42, %c1, %c0_43, %c0_44] : memref<1x3x16x16xf32, #tpu.memory_space<vmem>>, vector<1x1x6x16xf32>
    %123 = vector.shape_cast %122 : vector<1x1x6x16xf32> to vector<6x16xf32>
    %124 = vector.shape_cast %109 : vector<6x16xf32> to vector<1x1x6x16xf32>
    tpu.vector_store %arg6[%c0_42, %c1, %c0_43, %c0_44], %124 {strides = array<i32>} : memref<1x3x16x16xf32, #tpu.memory_space<vmem>>, vector<1x1x6x16xf32>,
    %125 = arith.subf %73, %109 : vector<6x16xf32>
    %c0_45 = arith.constant 0 : index
    %c1_46 = arith.constant 1 : index
    %c6_47 = arith.constant 6 : index
    %c0_48 = arith.constant 0 : index
    %126 = vector.load %arg6[%c0_45, %c1_46, %c6_47, %c0_48] : memref<1x3x16x16xf32, #tpu.memory_space<vmem>>, vector<1x1x6x16xf32>
    %127 = vector.shape_cast %126 : vector<1x1x6x16xf32> to vector<6x16xf32>
    %128 = vector.shape_cast %125 : vector<6x16xf32> to vector<1x1x6x16xf32>
    tpu.vector_store %arg6[%c0_45, %c1_46, %c6_47, %c0_48], %128 {strides = array<i32>} : memref<1x3x16x16xf32, #tpu.memory_space<vmem>>, vector<1x1x6x16xf32>,
    %c0_49 = arith.constant 0 : index
    %c1_50 = arith.constant 1 : index
    %c12_51 = arith.constant 12 : index
    %c0_52 = arith.constant 0 : index
    %129 = vector.load %arg6[%c0_49, %c1_50, %c12_51, %c0_52] : memref<1x3x16x16xf32, #tpu.memory_space<vmem>>, vector<1x1x4x16xf32>
    %130 = vector.shape_cast %129 : vector<1x1x4x16xf32> to vector<4x16xf32>
    %131 = vector.shape_cast %111 : vector<4x16xf32> to vector<1x1x4x16xf32>
    tpu.vector_store %arg6[%c0_49, %c1_50, %c12_51, %c0_52], %131 {strides = array<i32>} : memref<1x3x16x16xf32, #tpu.memory_space<vmem>>, vector<1x1x4x16xf32>,
    %c0_53 = arith.constant 0 : index
    %c2 = arith.constant 2 : index
    %c0_54 = arith.constant 0 : index
    %c0_55 = arith.constant 0 : index
    %132 = vector.load %arg6[%c0_53, %c2, %c0_54, %c0_55] : memref<1x3x16x16xf32, #tpu.memory_space<vmem>>, vector<1x1x6x16xf32>
    %133 = vector.shape_cast %132 : vector<1x1x6x16xf32> to vector<6x16xf32>
    %134 = vector.shape_cast %109 : vector<6x16xf32> to vector<1x1x6x16xf32>
    tpu.vector_store %arg6[%c0_53, %c2, %c0_54, %c0_55], %134 {strides = array<i32>} : memref<1x3x16x16xf32, #tpu.memory_space<vmem>>, vector<1x1x6x16xf32>,
    %135 = arith.subf %96, %109 : vector<6x16xf32>
    %c0_56 = arith.constant 0 : index
    %c2_57 = arith.constant 2 : index
    %c6_58 = arith.constant 6 : index
    %c0_59 = arith.constant 0 : index
    %136 = vector.load %arg6[%c0_56, %c2_57, %c6_58, %c0_59] : memref<1x3x16x16xf32, #tpu.memory_space<vmem>>, vector<1x1x6x16xf32>
    %137 = vector.shape_cast %136 : vector<1x1x6x16xf32> to vector<6x16xf32>
    %138 = vector.shape_cast %135 : vector<6x16xf32> to vector<1x1x6x16xf32>
    tpu.vector_store %arg6[%c0_56, %c2_57, %c6_58, %c0_59], %138 {strides = array<i32>} : memref<1x3x16x16xf32, #tpu.memory_space<vmem>>, vector<1x1x6x16xf32>,
    %c0_60 = arith.constant 0 : index
    %c2_61 = arith.constant 2 : index
    %c12_62 = arith.constant 12 : index
    %c0_63 = arith.constant 0 : index
    %139 = vector.load %arg6[%c0_60, %c2_61, %c12_62, %c0_63] : memref<1x3x16x16xf32, #tpu.memory_space<vmem>>, vector<1x1x4x16xf32>
    %140 = vector.shape_cast %139 : vector<1x1x4x16xf32> to vector<4x16xf32>
    %141 = vector.shape_cast %111 : vector<4x16xf32> to vector<1x1x4x16xf32>
    tpu.vector_store %arg6[%c0_60, %c2_61, %c12_62, %c0_63], %141 {strides = array<i32>} : memref<1x3x16x16xf32, #tpu.memory_space<vmem>>, vector<1x1x4x16xf32>,
    return
  }
  func.func @transform_0(%arg0: i32, %arg1: i32) -> (i32, i32, i32) {
    %c0_i32 = arith.constant 0 : i32
    %c0_i32_0 = arith.constant 0 : i32
    return %arg0, %c0_i32, %arg1 : i32, i32, i32
  }
  func.func @transform_1(%arg0: i32, %arg1: i32) -> (i32, i32, i32) {
    %c0_i32 = arith.constant 0 : i32
    %c0_i32_0 = arith.constant 0 : i32
    %c0_i32_1 = arith.constant 0 : i32
    return %arg0, %c0_i32, %c0_i32_0 : i32, i32, i32
  }
  func.func @transform_2(%arg0: i32, %arg1: i32) -> (i32, i32, i32) {
    %c0_i32 = arith.constant 0 : i32
    %c0_i32_0 = arith.constant 0 : i32
    return %arg0, %c0_i32, %arg1 : i32, i32, i32
  }
  func.func @transform_3(%arg0: i32, %arg1: i32) -> (i32, i32, i32) {
    %c0_i32 = arith.constant 0 : i32
    %c0_i32_0 = arith.constant 0 : i32
    %c0_i32_1 = arith.constant 0 : i32
    return %arg0, %c0_i32, %c0_i32_0 : i32, i32, i32
  }
  func.func @transform_4(%arg0: i32, %arg1: i32) -> (i32, i32, i32, i32) {
    %c0_i32 = arith.constant 0 : i32
    %c0_i32_0 = arith.constant 0 : i32
    %c0_i32_1 = arith.constant 0 : i32
    return %arg0, %c0_i32, %c0_i32_0, %arg1 : i32, i32, i32, i32
  }
}

</mosaic_0001>

<bundles_post_ra>
// kernel: tpu_custom_call.1
= control target key start
LH: loop header
LB: loop body
LE: loop exit
PB: predicated region body
PF: predicated region fallthrough
CT: control target
= control target key end

     0   :  { %9 = vsyncpa [#allocation3], 0  ;;  %s1185_s0 = inlined_call_operand.vmem [shape: f32[2,3,16], index: 0, kind: input, shape index: {}]   ;;  %s1186_s1 = inlined_call_operand.vmem [shape: f32[2,8,3], index: 1, kind: input, shape index: {}]   ;;  %s1187_s2 = inlined_call_operand.vmem [shape: f32[2,4,16], index: 2, kind: input, shape index: {}]   ;;  %s1188_s3 = inlined_call_operand.vmem [shape: f32[2,6,8], index: 3, kind: input, shape index: {}]   ;;  %s1189_s4 = inlined_call_operand.hbm [shape: f32[2,3,16,16], index: 4, kind: output, shape index: {}]  }
   0x1   :  { %11 = vsyncpa [#allocation3 + $0x1], 0  ;;  %s1009_s15 = smov 0   ;;  %s1011_s16 = smov 0  }
   0x2   :  { %s1013_s17 = smov 0   ;;  %s1015_s18 = smov 0  }
   0x3   :  { %s1017_s19 = smov 0   ;;  %s1019_s20 = smov 0  }
   0x4 LB: > { %s770_s21 = sadd.s32 4294967295, %s973_s20   ;;  %s771_s22 = sadd.s32 4294967294, %s973_s20   ;;  %s973_s20 = sphi %s1019_s20, %s17_s20   ;;  %s969_s19 = sphi %s1017_s19, %s1196_s19   ;;  %s965_s18 = sphi %s1015_s18, %s1195_s18   ;;  %s961_s17 = sphi %s1013_s17, %s1194_s17   ;;  %s957_s16 = sphi %s1011_s16, %s1193_s16   ;;  %s953_s15 = sphi %s1009_s15, %s1192_s15  }
   0x5   : > { %s29_s23 = sadd.s32 1, %s969_s19  ;;  %s146_s24 = sadd.s32 1, %s961_s17 }
   0x6   : > { %p31_p0 = scmp.ge.s32.totalorder %s29_s23, 2  ;;  %p156_p1 = scmp.ne.s32.totalorder %s961_s17, %s957_s16 }
   0x7   : > { %p157_p2 = scmp.eq.s32.totalorder %s770_s21, 1  ;;  %p162_p3 = scmp.ne.s32.totalorder %s957_s16, %s953_s15 }
   0x8   : > { %s1198_s23 = smov (%p31_p0, %s29_s23), 0  ;;  %p163_p5 = scmp.eq.s32.totalorder %s771_s22, 1 }
   0x9   : > { %p1049_p4 = por %p157_p2, %p156_p1  ;;  %s141_s26 = ssub.s32 %s969_s19, %s1198_s23 }
   0xa   : > { %p774_p6 = scmp.ge.s32.totalorder %s973_s20, 1  ;;  %p144_p7 = scmp.eq.s32.totalorder %s141_s26, 0 }
   0xb   : > { %p1056_p8 = por %p163_p5, %p162_p3  ;;  %p215_p9 = scmp.lt.s32.totalorder %s973_s20, 3 }
   0xc   : > { %s1062_s28 = scalar_select %p144_p7, %s961_s17, %s146_s24  }
   0xd   : > { %p216_p10 = pnand %p774_p6, %p215_p9 }
   0xe   : > { %p258_p11 = scmp.lt.s32.totalorder (!%p216_p10), %s965_s18, 1  ;;  %v975_v0 = vmov (!%p216_p10), 0   ;;  %v976_v1 = vmov (!%p216_p10), 2   ;;  %s255_s9 = sand.u32 (!%p216_p10), 1, %s957_s16   ;;  %vm629_vm0 = vcmask (!%p216_p10), 125952   ;;  %v977_v4 = vmov (!%p216_p10), 1  }
   0xf   : > { %219 = sbr.rel (%p216_p10) target bundleno = 492 (0x1ec), region = 36  ;;  %883 = vset.pattern.permute.xlu0 (!%p216_p10), %v975_v0  ;;  %885 = vset.pattern.permute.xlu1 (!%p216_p10), %v976_v1  ;;  %v978_v5 = vmov (!%p216_p10), 0.0   ;;  %vm979_vm1 = vmmov (!%p216_p10), 0   ;;  %v288_v6 = vlaneseq (!%p216_p10)  ;;  %vm319_vm2 = vcmask (!%p216_p10), 130048  }
  0x10   : > { %s818_s13 = smul.u32 (!%p216_p10), 48, %s255_s9  ;;  %803 = vmatprep.subr.mxu0 (!%p216_p10), %v978_v5  ;;  %808 = vmatprep.subr.mxu1 (!%p216_p10), %v978_v5  ;;  %vm346_vm7 = vcmask (!%p216_p10), 64512   ;;  %v980_v42 = vmov (!%p216_p10), 1.0  }
  0x11   : > { %805 = vmatprep.mubr.msk.f32.mxu0 (!%p216_p10), %vm979_vm1, %v978_v5  ;;  %810 = vmatprep.mubr.msk.f32.mxu1 (!%p216_p10), %vm979_vm1, %v978_v5  ;;  %v1088_v7 = vshrl.u32 (!%p216_p10), %v288_v6, 7 }
  0x12   : > { %s1081_s14 = scalar_lea.vmem (!%p216_p10), [#allocation2], %s818_s13 }
  0x13   : > { %v290_v8 = vsub.s32 (!%p216_p10), 0, %v1088_v7  ;;  %v312_v9 = vsub.s32 (!%p216_p10), 2, %v1088_v7  ;;  %v301_v11 = vsub.s32 (!%p216_p10), 1, %v1088_v7 }
  0x16   : > { %s1066_s29 = scalar_select %p258_p11, %s965_s18, 1 }
  0x18   : > { %s776_s30 = sshll.u32 %s1066_s29, 3  ;;  %s775_s8 = sshll.u32 %s1066_s29, 2 }
  0x19   : > { %s268_s7 = scalar_lea.vmem %s1186_s1, %s776_s30  ;;  %s275_s12 = scalar_lea.vmem %s1187_s2, %s775_s8 }
  0x1a   : > { %v281_v2 = vld [vmem:[%s268_s7] sm:$0xff]  ;;  %s264_s24 = scalar_lea.vmem %s1185_s0, %s775_s8  ;;  %s279_s6 = scalar_lea.vmem %s1188_s3, %s776_s30 }
  0x1b   : > { %285 = vperm.xlu0 %883, %v281_v2   ;;  %307 = vperm.xlu1 %885, %v281_v2   ;;  %v624_v3 = vld [vmem:[%s275_s12] sm:$0xf]  ;;  %s819_s29 = smul.u32 768, %s965_s18  ;;  %s656_s30 = sshll.u32 %s1081_s14, 4  ;;  %s1129_s30 = int_to_ptr.vmem [resolvable:$true] %s656_s30 }
  0x1c   : > { %630 = vst.msk [vmem:[%s1081_s14 + $0xc] sm:$0xf] %vm629_vm0, %v624_v3  ;;  %790 = vst.msk [vmem:[%s1081_s14 + $0x1c] sm:$0xf] %vm629_vm0, %v624_v3  ;;  %v280_v10 = vld [vmem:[%s264_s24] sm:$0x7] }
  0x1d   : > { %793 = vst.msk [vmem:[%s1081_s14 + $0x2c] sm:$0xf] %vm629_vm0, %v624_v3  ;;  %v291_v13 = vrot.slane %v280_v10, %v290_v8  ;;  %v313_v14 = vrot.slane %v280_v10, %v312_v9  ;;  %v302_v16 = vrot.slane %v280_v10, %v301_v11  ;;  %v1104_v41 = vld [vmem:[%s279_s6] sm:$0x3f]  ;;  %s1127_s10 = scalar_lea.hbm %s1189_s4, %s819_s29  ;;  %s1139_s18 = scalar_lea.sflag [#allocation3], %s255_s9 }
  0x1e   : > { %s895_s11 = scalar_lea.vmem %s1129_s30, 768  ;;  %s981_s12 = smov [#allocation2]  }
  0x1f   : > { %884 = vset.pattern.permute.xlu0 %v977_v4  ;;  %p896_p12 = scmp.ne.s32.totalorder %s1129_s30, %s895_s11  ;;  %s899_s13 = sshll.u32 %s981_s12, 4  ;;  %s900_s13 = int_to_ptr.vmem [resolvable:$false] %s899_s13 }
  0x20   : > { %296 = vperm.xlu0 %884, %v281_v2   ;;  %s901_s21 = scalar_lea.vmem %s900_s13, 1536  ;;  %p902_p1 = scmp.lt.s32.totalorder %s1129_s30, %s900_s13 }
  0x21   : > { %p897_p13 = pnand %p896_p12, %p1049_p4  ;;  %p903_p2 = scmp.lt.s32.totalorder %s901_s21, %s895_s11 }
  0x23   : > { %p898_p0 = pneg %p897_p13  ;;  %p904_p3 = por %p903_p2, %p902_p1 }
  0x24   : > { %886 = vset.pattern.permute.xlu0 %v976_v1 }
  0x25   : > { %p905_p5 = pnand %p904_p3, %p898_p0 }
  0x9a   : > { %v286_v12 = vpop.permute.xlu0 %285  ;;  %v308_v15 = vpop.permute.xlu1 %307 }
  0x9b   : > { %v292_v17 = vsub.f32 %v286_v12, %v291_v13  ;;  %v314_v18 = vsub.f32 %v308_v15, %v313_v14 }
  0x9d   : > { %v293_v21 = vmul.f32 %v292_v17, %v292_v17  ;;  %v315_v23 = vmul.f32 %v314_v18, %v314_v18 }
  0x9f   : > { %v297_v19 = vpop.permute.xlu0 %296 }
  0xa0   : > { %v303_v20 = vsub.f32 %v297_v19, %v302_v16 }
  0xa2   : > { %v304_v22 = vmul.f32 %v303_v20, %v303_v20 }
  0xa4   : > { %v305_v24 = vadd.f32 %v304_v22, %v293_v21 }
  0xa6   : > { %v316_v25 = vadd.f32 %v315_v23, %v305_v24 }
  0xa8   : > { %v320_v26 = vsel %vm319_vm2, %v316_v25, inf }
  0xa9   : > { %v321_v27 = vrot.slane %v320_v26, 4 }
  0xab   : > { %v322_v28 = vmin.f32 %v320_v26, %v321_v27 }
  0xad   : > { %v323_v29 = vrot.slane %v322_v28, 2 }
  0xaf   : > { %v324_v30 = vmin.f32 %v322_v28, %v323_v29 }
  0xb1   : > { %v325_v31 = vrot.slane %v324_v30, 1 }
  0xb3   : > { %v326_v32 = vmin.f32 %v324_v30, %v325_v31 }
  0xb5   : > { %vm327_vm3 = vcmp.eq.f32.partialorder %v316_v25, %v326_v32  ;;  %v340_v50 = vmax.f32 %v326_v32, 1e-10 }
  0xb6   : > { %v328_v33 = vsel %vm327_vm3, %v1088_v7, 8 }
  0xb7   : > { %v329_v34 = vsel %vm319_vm2, %v328_v33, 2147483647  ;;  %887 = vrcp.f32 %v340_v50 }
  0xb8   : > { %v330_v35 = vrot.slane %v329_v34, 4 }
  0xba   : > { %vm331_vm4 = vcmp.lt.s32.totalorder %v329_v34, %v330_v35 }
  0xbb   : > { %v332_v36 = vsel %vm331_vm4, %v329_v34, %v330_v35 }
  0xbc   : > { %v333_v37 = vrot.slane %v332_v36, 2 }
  0xbe   : > { %vm334_vm5 = vcmp.lt.s32.totalorder %v332_v36, %v333_v37 }
  0xbf   : > { %v335_v38 = vsel %vm334_vm5, %v332_v36, %v333_v37 }
  0xc0   : > { %v336_v39 = vrot.slane %v335_v38, 1 }
  0xc1   : > { %v888_v59 = vpop.eup %887 }
  0xc2   : > { %vm337_vm6 = vcmp.lt.s32.totalorder %v335_v38, %v336_v39 }
  0xc3   : > { %v338_v40 = vsel %vm337_vm6, %v335_v38, %v336_v39 }
  0xc4   : > { %vm339_vm8 = vcmp.eq.s32.totalorder %v1088_v7, %v338_v40 }
  0xc5   : > { %804 = vmatpush3.msk.msra.mxu0 %vm339_vm8, %v980_v42  ;;  %v420_v43 = vsel %vm339_vm8, 1e+30, %v316_v25 }
  0xc6   : > { %v421_v44 = vsel %vm319_vm2, %v420_v43, inf  ;;  %806 = vmatmul.mubr.msk.f32.vlgmr.msra.gmra.mrb[0].mxu0 %vm346_vm7, %v1104_v41  ;;  %813 = vmatprep.subr.mxu0 %v978_v5 }
  0xc7   : > { %v422_v45 = vrot.slane %v421_v44, 4  ;;  %815 = vmatprep.mubr.msk.f32.mxu0 %vm979_vm1, %v978_v5 }
  0xc9   : > { %v423_v46 = vmin.f32 %v421_v44, %v422_v45 }
  0xcb   : > { %v424_v47 = vrot.slane %v423_v46, 2 }
  0xcd   : > { %v425_v48 = vmin.f32 %v423_v46, %v424_v47 }
  0xcf   : > { %v426_v49 = vrot.slane %v425_v48, 1 }
  0xd1   : > { %v427_v51 = vmin.f32 %v425_v48, %v426_v49 }
  0xd3   : > { %vm428_vm9 = vcmp.eq.f32.partialorder %v420_v43, %v427_v51  ;;  %v441_v52 = vmax.f32 %v427_v51, 1e-10 }
  0xd4   : > { %v429_v53 = vsel %vm428_vm9, %v1088_v7, 8 }
  0xd5   : > { %v430_v54 = vsel %vm319_vm2, %v429_v53, 2147483647  ;;  %889 = vrcp.f32 %v441_v52 }
  0xd6   : > { %v431_v55 = vrot.slane %v430_v54, 4 }
  0xd8   : > { %vm432_vm10 = vcmp.lt.s32.totalorder %v430_v54, %v431_v55 }
  0xd9   : > { %v433_v56 = vsel %vm432_vm10, %v430_v54, %v431_v55 }
  0xda   : > { %v434_v57 = vrot.slane %v433_v56, 2 }
  0xdc   : > { %vm435_vm11 = vcmp.lt.s32.totalorder %v433_v56, %v434_v57 }
  0xdd   : > { %v436_v58 = vsel %vm435_vm11, %v433_v56, %v434_v57 }
  0xde   : > { %v437_v60 = vrot.slane %v436_v58, 1 }
  0xdf   : > { %v890_v61 = vpop.eup %889 }
  0xe0   : > { %v444_v62 = vadd.f32 %v890_v61, %v888_v59  ;;  %vm438_vm12 = vcmp.lt.s32.totalorder %v436_v58, %v437_v60 }
  0xe1   : > { %v439_v63 = vsel %vm438_vm12, %v436_v58, %v437_v60 }
  0xe2   : > { %vm440_vm13 = vcmp.eq.s32.totalorder %v1088_v7, %v439_v63 }
  0xe3   : > { %809 = vmatpush3.msk.msra.mxu1 %vm440_vm13, %v980_v42  ;;  %v517_v0 = vsel %vm440_vm13, 1e+30, %v420_v43 }
  0xe4   : > { %v518_v1 = vsel %vm319_vm2, %v517_v0, inf  ;;  %811 = vmatmul.mubr.msk.f32.vlgmr.msra.gmra.mrb[0].mxu1 %vm346_vm7, %v1104_v41 }
  0xe5   : > { %v519_v2 = vrot.slane %v518_v1, 4 }
  0xe7   : > { %v520_v3 = vmin.f32 %v518_v1, %v519_v2 }
  0xe9   : > { %v521_v4 = vrot.slane %v520_v3, 2 }
  0xeb   : > { %v522_v5 = vmin.f32 %v520_v3, %v521_v4 }
  0xed   : > { %v523_v6 = vrot.slane %v522_v5, 1 }
  0xef   : > { %v524_v8 = vmin.f32 %v522_v5, %v523_v6 }
  0xf1   : > { %vm525_vm14 = vcmp.eq.f32.partialorder %v517_v0, %v524_v8  ;;  %v538_v9 = vmax.f32 %v524_v8, 1e-10 }
  0xf2   : > { %v526_v10 = vsel %vm525_vm14, %v1088_v7, 8 }
  0xf3   : > { %v527_v11 = vsel %vm319_vm2, %v526_v10, 2147483647  ;;  %891 = vrcp.f32 %v538_v9  ;;  %vm625_vm2 = vcmask 128000  }
  0xf4   : > { %v528_v12 = vrot.slane %v527_v11, 4 }
  0xf6   : > { %vm529_vm15 = vcmp.lt.s32.totalorder %v527_v11, %v528_v12 }
  0xf7   : > { %v530_v13 = vsel %vm529_vm15, %v527_v11, %v528_v12 }
  0xf8   : > { %v531_v14 = vrot.slane %v530_v13, 2 }
  0xfa   : > { %vm532_vm0 = vcmp.lt.s32.totalorder %v530_v13, %v531_v14 }
  0xfb   : > { %v533_v15 = vsel %vm532_vm0, %v530_v13, %v531_v14 }
  0xfc   : > { %v534_v16 = vrot.slane %v533_v15, 1 }
  0xfd   : > { %v892_v17 = vpop.eup %891 }
  0xfe   : > { %v541_v18 = vadd.f32 %v892_v17, %v444_v62  ;;  %vm535_vm1 = vcmp.lt.s32.totalorder %v533_v15, %v534_v16 }
  0xff   : > { %v536_v19 = vsel %vm535_vm1, %v533_v15, %v534_v16 }
 0x100   : > { %893 = vrcp.f32 %v541_v18  ;;  %vm537_vm3 = vcmp.eq.s32.totalorder %v1088_v7, %v536_v19 }
 0x101   : > { %814 = vmatpush3.msk.msra.mxu0 %vm537_vm3, %v980_v42 }
 0x102   : > { %816 = vmatmul.mubr.msk.f32.vlgmr.msra.gmra.mrb[2].mxu0 %vm346_vm7, %v1104_v41 }
 0x10a   : > { %v894_v20 = vpop.eup %893 }
 0x10b   : > { %v616_v21 = vmul.f32 %v894_v20, %v888_v59  ;;  %v618_v22 = vmul.f32 %v894_v20, %v890_v61  ;;  %v621_v23 = vmul.f32 %v894_v20, %v892_v17 }
 0x199   : > { %v416_v24 = vpop.f32.mrb[0].mxu0 }
 0x19a   : > { %v617_v25 = vmul.f32 %v616_v21, %v416_v24  ;;  %v807_v26 = vpop.f32.mrb[1].mxu0 }
 0x1b7   : > { %v513_v27 = vpop.f32.mrb[0].mxu1 }
 0x1b8   : > { %v619_v28 = vmul.f32 %v618_v22, %v513_v27  ;;  %v812_v29 = vpop.f32.mrb[1].mxu1 }
 0x1ba   : > { %v620_v30 = vadd.f32 %v619_v28, %v617_v25 }
 0x1d5   : > { %v610_v7 = vpop.f32.mrb[2].mxu0 }
 0x1d6   : > { %v622_v31 = vmul.f32 %v621_v23, %v610_v7  ;;  %v817_v32 = vpop.f32.mrb[3].mxu0 }
 0x1d8   : > { %v623_v33 = vadd.f32 %v622_v31, %v620_v30 }
 0x1da   : > { %626 = vst.msk [vmem:[%s1081_s14] sm:$0x3f] %vm625_vm2, %v623_v33  ;;  %v627_v34 = vsub.f32 %v416_v24, %v623_v33  ;;  %788 = vst.msk [vmem:[%s1081_s14 + $0x10] sm:$0x3f] %vm625_vm2, %v623_v33  ;;  %v633_v35 = vsub.f32 %v513_v27, %v623_v33  ;;  %v638_v36 = vsub.f32 %v610_v7, %v623_v33 }
 0x1db   : > { %791 = vst.msk [vmem:[%s1081_s14 + $0x20] sm:$0x3f] %vm625_vm2, %v623_v33 }
 0x1dc   : > { %628 = vst.msk [vmem:[%s1081_s14 + $0x6] sm:$0x3f] %vm625_vm2, %v627_v34  ;;  %789 = vst.msk [vmem:[%s1081_s14 + $0x16] sm:$0x3f] %vm625_vm2, %v633_v35 }
 0x1dd   : > { %792 = vst.msk [vmem:[%s1081_s14 + $0x26] sm:$0x3f] %vm625_vm2, %v638_v36 }
 0x1de   : > { %908 = shalt.err (!%p905_p5)
}
 0x1df   : > { %s909_s9 = scalar_lea.hbm %s1127_s10, 768  ;;  %s913_s24 = scalar_lea.hbm %s1189_s4, 1536 }
 0x1e0   : > { %p910_p6 = scmp.ne.s32.totalorder %s1127_s10, %s909_s9  ;;  %p914_p10 = scmp.lt.u32.totalorder %s1127_s10, %s1189_s4 }
 0x1e1   : > { %p915_p11 = scmp.lt.u32.totalorder %s913_s24, %s909_s9  ;;  %p917_p13 = scmp.lt.u32.totalorder %s909_s9, %s1127_s10 }
 0x1e2   : > { %p911_p7 = pnand %p910_p6, %p1049_p4 }
 0x1e3   : > { %p916_p12 = por %p915_p11, %p914_p10 }
 0x1e4   : > { %p912_p9 = pneg %p911_p7 }
 0x1e5   : > { %p918_p0 = por %p917_p13, %p916_p12 }
 0x1e7   : > { %p919_p1 = pnand %p918_p0, %p912_p9 }
 0x1e9   : > { %922 = shalt.err (!%p919_p1)
}
 0x1ea   : > { %s982_s6 = smov 128   ;;  %s983_s29 = smov 8  }
 0x1eb   : > { %820 = dma.vmem_to_hbm [thread:$0]  (%p1049_p4), %s1129_s30, 768, %s1127_s10, %s1139_s18, %s982_s6, %s982_s6, %s983_s29  }
 0x1ec PF: > { %p826_p2 = scmp.ge.s32.totalorder %s973_s20, 2  ;;  %s671_s7 = sand.u32 1, %s953_s15  }
 0x1ed   : > { %s672_s8 = scalar_lea.sflag [#allocation3], %s671_s7 }
 0x1ee   : > { %p823_p3 = pnand %p826_p2, %p1056_p8 }
 0x1f0   : > { %948 = dma.done.wait (!%p823_p3), %s672_s8, 768  }
 0x1f1   : > { %950 = vsyncadd (!%p823_p3), %s672_s8, 4294966528  ;;  %s17_s20 = sadd.s32 1, %s973_s20   ;;  %s1192_s15 = smov %s957_s16 }
 0x1f2   : > { %p14_p5 = scmp.ge.s32.totalorder %s17_s20, 4   ;;  %s1193_s16 = smov %s961_s17 }
 0x1f3   : > { %s1194_s17 = smov %s1062_s28  ;;  %s1195_s18 = smov %s969_s19 }
 0x1f4   : > { %s1196_s19 = smov %s1198_s23  ;;  %16 = sbr.rel (!%p14_p5) target bundleno = 4 (0x4), region = 82 }
 0x1fb   :  { %677 = vsyncpa [#allocation3], 1 }
 0x1fc   :  { %679 = vsyncpa [#allocation3 + $0x1], 1 }

</bundles_post_ra>
